<compile_context>
chip_gen: v5e
topology: v5e:2x2
jax: 0.10.0
libtpu: 0.0.40
codegen_flags: <defaults>
</compile_context>

<pallas_src>
import math
import functools

import jax
import jax.numpy as jnp
from jax.experimental import pallas as pl
from jax.experimental.pallas import tpu as pltpu


# ---------------------------------------------------------------------------
# Fused kernel (single invocation, everything resident in VMEM):
#   self-attn + out3 -> {cross-attn1 + out1, cross-attn2 + out2} -> gate
# Inputs (7): x(B*S,H) f32, c1(B*S1,C1) bf16, c2(B*S2,C2) bf16,
#             w_h(H,8H) bf16, w_kv(C1+C2,2H) bf16, w_gate(2H,H) bf16,
#             vecs(24,H) f32.  Output: (B*S,H) f32.
# ---------------------------------------------------------------------------
def _fused_kernel(x_ref, c1_ref, c2_ref, wh_ref, wkv_ref, wg_ref, vec_ref,
                  o_ref, *, eps, B, S, S1, S2, H, C1, C2):
    bf16 = jnp.bfloat16

    xf = x_ref[...]            # (B*S, H)    f32 (also self-attn residual)
    c1 = c1_ref[...]           # (B*S1, C1)  bf16
    c2 = c2_ref[...]           # (B*S2, C2)  bf16
    wh = wh_ref[...]           # (H, 8H)     bf16 packed
    wkv = wkv_ref[...]         # (C1+C2, 2H) bf16 packed
    wg = wg_ref[...]           # (2H, H)     bf16 packed [W1; W2]
    vecs = vec_ref[...]        # (24, H)     f32 packed row vectors

    # Static unpacking of the weight slabs.
    w_self_qkv = wh[:, 0:3 * H]          # [wq*scale | wk | wv]
    w_self_o = wh[:, 3 * H:4 * H]
    w_cross_q = wh[:, 4 * H:6 * H]       # [c1 wq*scale | c2 wq*scale]
    w_c1_o = wh[:, 6 * H:7 * H]
    w_c2_o = wh[:, 7 * H:8 * H]
    w_c1_kv = wkv[0:C1, :]               # [c1 wk | c1 wv]
    w_c2_kv = wkv[C1:C1 + C2, :]         # [c2 wk | c2 wv]
    w_g1 = wg[0:H, :]
    w_g2 = wg[H:2 * H, :]

    def vrow(i):                         # (1, H) f32 bias / scale row
        return vecs[i:i + 1, :]

    def softmax_attn(q, k, v, Sq, Sk):
        # q: (B*Sq, H) f32, k/v: (B*Sk, H) f32 -> (B*Sq, H) f32
        q3 = q.reshape(B, Sq, H).astype(bf16)
        k3 = k.reshape(B, Sk, H).astype(bf16)
        v3 = v.reshape(B, Sk, H).astype(bf16)
        # Scale already folded into Wq / bq.
        s = jnp.einsum("bqh,bkh->bqk", q3, k3,
                       preferred_element_type=jnp.float32)
        s = s - jnp.max(s, axis=-1, keepdims=True)
        e = jnp.exp(s)
        p = e * pl.reciprocal(jnp.sum(e, axis=-1, keepdims=True), approx=True)
        a = jnp.einsum("bqk,bkh->bqh", p.astype(bf16), v3,
                       preferred_element_type=jnp.float32)
        return a.reshape(B * Sq, H)

    def attn_output(attn, residual, wo, bo, gamma, beta):
        # dense -> +residual -> LayerNorm (f32 math, bf16 MXU operands).
        h = jnp.dot(attn.astype(bf16), wo,
                    preferred_element_type=jnp.float32) + bo
        h = h + residual
        mu = jnp.mean(h, axis=-1, keepdims=True)
        var = jnp.mean((h - mu) ** 2, axis=-1, keepdims=True)
        y = (h - mu) * jax.lax.rsqrt(var + eps)
        return y * gamma + beta

    # ---- self-attention + out3 -------------------------------------------
    xb = xf.astype(bf16)
    qkv = jnp.dot(xb, w_self_qkv, preferred_element_type=jnp.float32)  # (M,3H)
    q = qkv[:, 0:H] + vrow(0)
    k = qkv[:, H:2 * H] + vrow(1)
    v = qkv[:, 2 * H:3 * H] + vrow(2)
    attn = softmax_attn(q, k, v, S, S)
    self_out = attn_output(attn, xf, w_self_o, vrow(3), vrow(4), vrow(5))

    so_b = self_out.astype(bf16)

    # Both cross-attention query projections share one MXU pass.
    qq = jnp.dot(so_b, w_cross_q, preferred_element_type=jnp.float32)  # (M,2H)
    q1 = qq[:, 0:H] + vrow(6)
    q2 = qq[:, H:2 * H] + vrow(12)

    # ---- cross-attention 1 + out1 ------------------------------------------
    kv1 = jnp.dot(c1, w_c1_kv, preferred_element_type=jnp.float32)     # (B*S1,2H)
    k1 = kv1[:, 0:H] + vrow(7)
    v1 = kv1[:, H:2 * H] + vrow(8)
    a1 = softmax_attn(q1, k1, v1, S, S1)
    cross_1 = attn_output(a1, self_out, w_c1_o, vrow(9), vrow(10), vrow(11))

    # ---- cross-attention 2 + out2 ------------------------------------------
    kv2 = jnp.dot(c2, w_c2_kv, preferred_element_type=jnp.float32)     # (B*S2,2H)
    k2 = kv2[:, 0:H] + vrow(13)
    v2 = kv2[:, H:2 * H] + vrow(14)
    a2 = softmax_attn(q2, k2, v2, S, S2)
    cross_2 = attn_output(a2, self_out, w_c2_o, vrow(15), vrow(16), vrow(17))

    # ---- gate: G = sigmoid(x1 W1 + x2 W2 + b); Z = G*x1 + (1-G)*x2 ---------
    g = jax.nn.sigmoid(
        jnp.dot(cross_1.astype(bf16), w_g1, preferred_element_type=jnp.float32)
        + jnp.dot(cross_2.astype(bf16), w_g2, preferred_element_type=jnp.float32)
        + vrow(18))
    o_ref[...] = (g * cross_1 + (1.0 - g) * cross_2).astype(o_ref.dtype)


# ---------------------------------------------------------------------------
# One-time parameter packing (bf16 weight slabs, f32 vector slab, scale folded
# into wq / bq).  Done ONCE, outside the per-call wrapper.
# ---------------------------------------------------------------------------
def pack_params(params, H):
    scale = 1.0 / math.sqrt(H)            # nhead=1 -> head_size == hidden_size
    ps, p1, p2 = params["self_out3"], params["ca1_out1"], params["ca2_out2"]
    pg = params["gate"]

    w_h = jnp.concatenate(
        [ps["wq"] * scale, ps["wk"], ps["wv"], ps["wo"],
         p1["wq"] * scale, p2["wq"] * scale, p1["wo"], p2["wo"]], axis=1)
    w_kv = jnp.concatenate(
        [jnp.concatenate([p1["wk"], p1["wv"]], axis=1),
         jnp.concatenate([p2["wk"], p2["wv"]], axis=1)], axis=0)
    w_gate = jnp.concatenate([pg["w1"], pg["w2"]], axis=0)

    def rows(p):
        return [p["bq"] * scale, p["bk"], p["bv"], p["bo"], p["gamma"], p["beta"]]

    vec_rows = rows(ps) + rows(p1) + rows(p2) + [pg["b"]]        # 19 rows
    pad = jnp.zeros((24 - len(vec_rows), H), jnp.float32)
    vecs = jnp.concatenate(vec_rows + [pad], axis=0)             # (24, H)

    bf = lambda w: w.astype(jnp.bfloat16)
    return {"w_h": bf(w_h), "w_kv": bf(w_kv), "w_gate": bf(w_gate),
            "vecs": vecs.astype(jnp.float32)}


# ---------------------------------------------------------------------------
# Wrapper: one pallas_call for the whole layer (no grid -> single invocation).
# ---------------------------------------------------------------------------
def cross_attention_layer(hidden, cross1_bf16, cross2_bf16, packed, eps=1e-5):
    B, S, H = hidden.shape
    _, S1, C1 = cross1_bf16.shape
    _, S2, C2 = cross2_bf16.shape

    x2d = hidden.reshape(B * S, H)
    c1_2d = cross1_bf16.reshape(B * S1, C1)
    c2_2d = cross2_bf16.reshape(B * S2, C2)

    kernel = functools.partial(_fused_kernel, eps=eps, B=B, S=S, S1=S1, S2=S2,
                               H=H, C1=C1, C2=C2)
    vmem = pl.BlockSpec(memory_space=pltpu.MemorySpace.VMEM)
    out2d = pl.pallas_call(
        kernel,
        out_shape=jax.ShapeDtypeStruct((B * S, H), jnp.float32),
        in_specs=[vmem] * 7,
        out_specs=vmem,
        compiler_params=pltpu.CompilerParams(
            vmem_limit_bytes=32 * 1024 * 1024),
    )(x2d, c1_2d, c2_2d, packed["w_h"], packed["w_kv"], packed["w_gate"],
      packed["vecs"])
    return out2d.reshape(B, S, H)


# ---------------------------------------------------------------------------
# Deterministic parameter construction + pure-JAX f32 reference.
# ---------------------------------------------------------------------------
def make_attn_params(key, H, Ck):
    ks = jax.random.split(key, 8)
    s = 0.05
    return {
        "wq": jax.random.normal(ks[0], (H, H), jnp.float32) * s,
        "bq": jax.random.normal(ks[1], (1, H), jnp.float32) * s,
        "wk": jax.random.normal(ks[2], (Ck, H), jnp.float32) * s,
        "bk": jax.random.normal(ks[3], (1, H), jnp.float32) * s,
        "wv": jax.random.normal(ks[4], (Ck, H), jnp.float32) * s,
        "bv": jax.random.normal(ks[5], (1, H), jnp.float32) * s,
        "wo": jax.random.normal(ks[6], (H, H), jnp.float32) * s,
        "bo": jax.random.normal(ks[7], (1, H), jnp.float32) * s,
        "gamma": jnp.ones((1, H), jnp.float32),
        "beta": jnp.zeros((1, H), jnp.float32),
    }


def ref_attn_block(x, ctx, res, p, scale, eps=1e-5):
    q = x @ p["wq"] + p["bq"]
    k = ctx @ p["wk"] + p["bk"]
    v = ctx @ p["wv"] + p["bv"]
    s = jnp.einsum("bqh,bkh->bqk", q, k) * scale
    a = jax.nn.softmax(s, axis=-1)
    c = jnp.einsum("bqk,bkh->bqh", a, v)
    h = c @ p["wo"] + p["bo"] + res
    mu = h.mean(-1, keepdims=True)
    var = ((h - mu) ** 2).mean(-1, keepdims=True)
    return (h - mu) * jax.lax.rsqrt(var + eps) * p["gamma"] + p["beta"]


def ref_forward(hidden, c1, c2, params, H):
    scale = 1.0 / math.sqrt(H)
    so = ref_attn_block(hidden, hidden, hidden, params["self_out3"], scale)
    x1 = ref_attn_block(so, c1, so, params["ca1_out1"], scale)
    x2 = ref_attn_block(so, c2, so, params["ca2_out2"], scale)
    g = jax.nn.sigmoid(x1 @ params["gate"]["w1"] + x2 @ params["gate"]["w2"]
                       + params["gate"]["b"])
    return g * x1 + (1 - g) * x2


if __name__ == "__main__":
    B, S, H = 2, 8, 32          # batch, query seq, hidden_size
    S1, C1 = 8, 48              # cross_states_1: seq, cross_size1
    S2, C2 = 8, 64              # cross_states_2: seq, cross_size2

    root = jax.random.PRNGKey(0)
    k_in, k_p1, k_p2, k_p3, k_g = jax.random.split(root, 5)
    ki = jax.random.split(k_in, 3)

    hidden = jax.random.normal(ki[0], (B, S, H), jnp.float32)
    cross1 = jax.random.normal(ki[1], (B, S1, C1), jnp.float32)
    cross2 = jax.random.normal(ki[2], (B, S2, C2), jnp.float32)

    kg = jax.random.split(k_g, 3)
    params = {
        "self_out3": make_attn_params(k_p1, H, H),
        "ca1_out1": make_attn_params(k_p2, H, C1),
        "ca2_out2": make_attn_params(k_p3, H, C2),
        "gate": {
            "w1": jax.random.normal(kg[0], (H, H), jnp.float32) * 0.05,
            "w2": jax.random.normal(kg[1], (H, H), jnp.float32) * 0.05,
            "b": jax.random.normal(kg[2], (1, H), jnp.float32) * 0.05,
        },
    }

    # One-time prep: packed bf16 weight slabs + bf16 contexts (K/V only).
    packed = jax.tree_util.tree_map(jax.block_until_ready, pack_params(params, H))
    cross1_bf = cross1.astype(jnp.bfloat16)
    cross2_bf = cross2.astype(jnp.bfloat16)

    out = cross_attention_layer(hidden, cross1_bf, cross2_bf, packed)
    out = jax.block_until_ready(out)

    ref = jax.block_until_ready(ref_forward(hidden, cross1, cross2, params, H))
    assert out.shape == (B, S, H)
    # Tolerance accounts for bf16 MXU operands / bf16 contexts + approx
    # reciprocal vs. the f32 reference (observed ~1e-3; 2e-2 gives margin).
    assert jnp.allclose(out, ref, atol=2e-2, rtol=2e-2), "mismatch vs reference"

    print("KERNEL_OK")
</pallas_src>

<mosaic_0001>
module attributes {stable_mosaic.version = 11 : i64} {
  func.func @_fused_kernel(%arg0: memref<16x32xf32, #tpu.memory_space<vmem>>, %arg1: memref<16x48xbf16, #tpu.memory_space<vmem>>, %arg2: memref<16x64xbf16, #tpu.memory_space<vmem>>, %arg3: memref<32x256xbf16, #tpu.memory_space<vmem>>, %arg4: memref<112x64xbf16, #tpu.memory_space<vmem>>, %arg5: memref<64x32xbf16, #tpu.memory_space<vmem>>, %arg6: memref<24x32xf32, #tpu.memory_space<vmem>>, %arg7: memref<16x32xf32, #tpu.memory_space<vmem>>) attributes {dimension_semantics = [], scalar_prefetch = 0 : i64, scratch_operands = 0 : i64, tpu.core_type = #tpu.core_type<tc>} {
    %c0 = arith.constant 0 : index
    %c0_0 = arith.constant 0 : index
    %0 = vector.load %arg0[%c0, %c0_0] : memref<16x32xf32, #tpu.memory_space<vmem>>, vector<16x32xf32>
    %c0_1 = arith.constant 0 : index
    %c0_2 = arith.constant 0 : index
    %1 = vector.load %arg1[%c0_1, %c0_2] : memref<16x48xbf16, #tpu.memory_space<vmem>>, vector<16x48xbf16>
    %c0_3 = arith.constant 0 : index
    %c0_4 = arith.constant 0 : index
    %2 = vector.load %arg2[%c0_3, %c0_4] : memref<16x64xbf16, #tpu.memory_space<vmem>>, vector<16x64xbf16>
    %c0_5 = arith.constant 0 : index
    %c0_6 = arith.constant 0 : index
    %3 = vector.load %arg3[%c0_5, %c0_6] : memref<32x256xbf16, #tpu.memory_space<vmem>>, vector<32x256xbf16>
    %c0_7 = arith.constant 0 : index
    %c0_8 = arith.constant 0 : index
    %4 = vector.load %arg4[%c0_7, %c0_8] : memref<112x64xbf16, #tpu.memory_space<vmem>>, vector<112x64xbf16>
    %c0_9 = arith.constant 0 : index
    %c0_10 = arith.constant 0 : index
    %5 = vector.load %arg5[%c0_9, %c0_10] : memref<64x32xbf16, #tpu.memory_space<vmem>>, vector<64x32xbf16>
    %c0_11 = arith.constant 0 : index
    %c0_12 = arith.constant 0 : index
    %6 = vector.load %arg6[%c0_11, %c0_12] : memref<24x32xf32, #tpu.memory_space<vmem>>, vector<24x32xf32>
    %7 = vector.extract_strided_slice %3 {offsets = [0, 0], sizes = [32, 96], strides = [1, 1]} : vector<32x256xbf16> to vector<32x96xbf16>
    %8 = vector.extract_strided_slice %3 {offsets = [0, 96], sizes = [32, 32], strides = [1, 1]} : vector<32x256xbf16> to vector<32x32xbf16>
    %9 = vector.extract_strided_slice %3 {offsets = [0, 128], sizes = [32, 64], strides = [1, 1]} : vector<32x256xbf16> to vector<32x64xbf16>
    %10 = vector.extract_strided_slice %3 {offsets = [0, 192], sizes = [32, 32], strides = [1, 1]} : vector<32x256xbf16> to vector<32x32xbf16>
    %11 = vector.extract_strided_slice %3 {offsets = [0, 224], sizes = [32, 32], strides = [1, 1]} : vector<32x256xbf16> to vector<32x32xbf16>
    %12 = vector.extract_strided_slice %4 {offsets = [0, 0], sizes = [48, 64], strides = [1, 1]} : vector<112x64xbf16> to vector<48x64xbf16>
    %13 = vector.extract_strided_slice %4 {offsets = [48, 0], sizes = [64, 64], strides = [1, 1]} : vector<112x64xbf16> to vector<64x64xbf16>
    %14 = vector.extract_strided_slice %5 {offsets = [0, 0], sizes = [32, 32], strides = [1, 1]} : vector<64x32xbf16> to vector<32x32xbf16>
    %15 = vector.extract_strided_slice %5 {offsets = [32, 0], sizes = [32, 32], strides = [1, 1]} : vector<64x32xbf16> to vector<32x32xbf16>
    %16 = arith.truncf %0 : vector<16x32xf32> to vector<16x32xbf16>
    %cst = arith.constant dense<0.000000e+00> : vector<16x96xf32>
    %17 = tpu.matmul %16, %7, %cst {dimension_numbers = #tpu.dot_dimension_numbers<[1], [0], [0], [1], [0, 0, 1, 1], [], []>} : vector<16x32xbf16>, vector<32x96xbf16>, vector<16x96xf32> -> vector<16x96xf32>
    %18 = vector.extract_strided_slice %17 {offsets = [0, 0], sizes = [16, 32], strides = [1, 1]} : vector<16x96xf32> to vector<16x32xf32>
    %19 = vector.extract_strided_slice %6 {offsets = [0, 0], sizes = [1, 32], strides = [1, 1]} : vector<24x32xf32> to vector<1x32xf32>
    %20 = vector.broadcast %19 : vector<1x32xf32> to vector<16x32xf32>
    %21 = arith.addf %18, %20 : vector<16x32xf32>
    %22 = vector.extract_strided_slice %17 {offsets = [0, 32], sizes = [16, 32], strides = [1, 1]} : vector<16x96xf32> to vector<16x32xf32>
    %23 = vector.extract_strided_slice %6 {offsets = [1, 0], sizes = [1, 32], strides = [1, 1]} : vector<24x32xf32> to vector<1x32xf32>
    %24 = vector.broadcast %23 : vector<1x32xf32> to vector<16x32xf32>
    %25 = arith.addf %22, %24 : vector<16x32xf32>
    %26 = vector.extract_strided_slice %17 {offsets = [0, 64], sizes = [16, 32], strides = [1, 1]} : vector<16x96xf32> to vector<16x32xf32>
    %27 = vector.extract_strided_slice %6 {offsets = [2, 0], sizes = [1, 32], strides = [1, 1]} : vector<24x32xf32> to vector<1x32xf32>
    %28 = vector.broadcast %27 : vector<1x32xf32> to vector<16x32xf32>
    %29 = arith.addf %26, %28 : vector<16x32xf32>
    %30 = vector.shape_cast %21 : vector<16x32xf32> to vector<2x8x32xf32>
    %31 = arith.truncf %30 : vector<2x8x32xf32> to vector<2x8x32xbf16>
    %32 = vector.shape_cast %25 : vector<16x32xf32> to vector<2x8x32xf32>
    %33 = arith.truncf %32 : vector<2x8x32xf32> to vector<2x8x32xbf16>
    %34 = vector.shape_cast %29 : vector<16x32xf32> to vector<2x8x32xf32>
    %35 = arith.truncf %34 : vector<2x8x32xf32> to vector<2x8x32xbf16>
    "tpu.trace_start"() <{level = 10 : i32, message = "bqh,bkh->bqk"}> : () -> ()
    %cst_13 = arith.constant dense<0.000000e+00> : vector<2x8x8xf32>
    %36 = tpu.matmul %31, %33, %cst_13 {dimension_numbers = #tpu.dot_dimension_numbers<[2], [2], [1], [1], [0, 0, 0, 1, 1, 1], [0], [0]>} : vector<2x8x32xbf16>, vector<2x8x32xbf16>, vector<2x8x8xf32> -> vector<2x8x8xf32>
    "tpu.trace_stop"() : () -> ()
    %cst_14 = arith.constant dense<0xFF800000> : vector<2x8xf32>
    %37 = vector.multi_reduction <maximumf>, %36, %cst_14 [2] : vector<2x8x8xf32> to vector<2x8xf32>
    %38 = vector.shape_cast %37 : vector<2x8xf32> to vector<2x8x1xf32>
    %39 = vector.broadcast %38 : vector<2x8x1xf32> to vector<2x8x8xf32>
    %40 = arith.subf %36, %39 : vector<2x8x8xf32>
    %41 = math.exp %40 : vector<2x8x8xf32>
    %cst_15 = arith.constant dense<0.000000e+00> : vector<2x8xf32>
    %42 = vector.multi_reduction <add>, %41, %cst_15 [2] : vector<2x8x8xf32> to vector<2x8xf32>
    %43 = vector.shape_cast %42 : vector<2x8xf32> to vector<2x8x1xf32>
    %44 = tpu.reciprocal %43 {approx = true} : vector<2x8x1xf32> -> vector<2x8x1xf32>
    %45 = vector.broadcast %44 : vector<2x8x1xf32> to vector<2x8x8xf32>
    %46 = arith.mulf %41, %45 : vector<2x8x8xf32>
    %47 = arith.truncf %46 : vector<2x8x8xf32> to vector<2x8x8xbf16>
    "tpu.trace_start"() <{level = 10 : i32, message = "bqk,bkh->bqh"}> : () -> ()
    %cst_16 = arith.constant dense<0.000000e+00> : vector<2x8x32xf32>
    %48 = tpu.matmul %47, %35, %cst_16 {dimension_numbers = #tpu.dot_dimension_numbers<[2], [1], [1], [2], [0, 0, 0, 1, 1, 2], [0], [0]>} : vector<2x8x8xbf16>, vector<2x8x32xbf16>, vector<2x8x32xf32> -> vector<2x8x32xf32>
    "tpu.trace_stop"() : () -> ()
    %49 = vector.shape_cast %48 : vector<2x8x32xf32> to vector<16x32xf32>
    %50 = vector.extract_strided_slice %6 {offsets = [3, 0], sizes = [1, 32], strides = [1, 1]} : vector<24x32xf32> to vector<1x32xf32>
    %51 = vector.extract_strided_slice %6 {offsets = [4, 0], sizes = [1, 32], strides = [1, 1]} : vector<24x32xf32> to vector<1x32xf32>
    %52 = vector.extract_strided_slice %6 {offsets = [5, 0], sizes = [1, 32], strides = [1, 1]} : vector<24x32xf32> to vector<1x32xf32>
    %53 = arith.truncf %49 : vector<16x32xf32> to vector<16x32xbf16>
    %cst_17 = arith.constant dense<0.000000e+00> : vector<16x32xf32>
    %54 = tpu.matmul %53, %8, %cst_17 {dimension_numbers = #tpu.dot_dimension_numbers<[1], [0], [0], [1], [0, 0, 1, 1], [], []>} : vector<16x32xbf16>, vector<32x32xbf16>, vector<16x32xf32> -> vector<16x32xf32>
    %55 = vector.broadcast %50 : vector<1x32xf32> to vector<16x32xf32>
    %56 = arith.addf %54, %55 : vector<16x32xf32>
    %57 = arith.addf %56, %0 : vector<16x32xf32>
    %cst_18 = arith.constant dense<0.000000e+00> : vector<16xf32>
    %58 = vector.multi_reduction <add>, %57, %cst_18 [1] : vector<16x32xf32> to vector<16xf32>
    %59 = vector.shape_cast %58 : vector<16xf32> to vector<16x1xf32>
    %cst_19 = arith.constant 3.200000e+01 : f32
    %60 = vector.broadcast %cst_19 : f32 to vector<16x1xf32>
    %61 = arith.divf %59, %60 : vector<16x1xf32>
    %62 = vector.broadcast %61 : vector<16x1xf32> to vector<16x32xf32>
    %63 = arith.subf %57, %62 : vector<16x32xf32>
    %64 = arith.mulf %63, %63 : vector<16x32xf32>
    %cst_20 = arith.constant dense<0.000000e+00> : vector<16xf32>
    %65 = vector.multi_reduction <add>, %64, %cst_20 [1] : vector<16x32xf32> to vector<16xf32>
    %66 = vector.shape_cast %65 : vector<16xf32> to vector<16x1xf32>
    %cst_21 = arith.constant 3.200000e+01 : f32
    %67 = vector.broadcast %cst_21 : f32 to vector<16x1xf32>
    %68 = arith.divf %66, %67 : vector<16x1xf32>
    %69 = vector.broadcast %61 : vector<16x1xf32> to vector<16x32xf32>
    %70 = arith.subf %57, %69 : vector<16x32xf32>
    %cst_22 = arith.constant 9.99999974E-6 : f32
    %71 = vector.broadcast %cst_22 : f32 to vector<16x1xf32>
    %72 = arith.addf %68, %71 : vector<16x1xf32>
    %73 = math.rsqrt %72 : vector<16x1xf32>
    %74 = vector.broadcast %73 : vector<16x1xf32> to vector<16x32xf32>
    %75 = arith.mulf %70, %74 : vector<16x32xf32>
    %76 = vector.broadcast %51 : vector<1x32xf32> to vector<16x32xf32>
    %77 = arith.mulf %75, %76 : vector<16x32xf32>
    %78 = vector.broadcast %52 : vector<1x32xf32> to vector<16x32xf32>
    %79 = arith.addf %77, %78 : vector<16x32xf32>
    %80 = arith.truncf %79 : vector<16x32xf32> to vector<16x32xbf16>
    %cst_23 = arith.constant dense<0.000000e+00> : vector<16x64xf32>
    %81 = tpu.matmul %80, %9, %cst_23 {dimension_numbers = #tpu.dot_dimension_numbers<[1], [0], [0], [1], [0, 0, 1, 1], [], []>} : vector<16x32xbf16>, vector<32x64xbf16>, vector<16x64xf32> -> vector<16x64xf32>
    %82 = vector.extract_strided_slice %81 {offsets = [0, 0], sizes = [16, 32], strides = [1, 1]} : vector<16x64xf32> to vector<16x32xf32>
    %83 = vector.extract_strided_slice %6 {offsets = [6, 0], sizes = [1, 32], strides = [1, 1]} : vector<24x32xf32> to vector<1x32xf32>
    %84 = vector.broadcast %83 : vector<1x32xf32> to vector<16x32xf32>
    %85 = arith.addf %82, %84 : vector<16x32xf32>
    %86 = vector.extract_strided_slice %81 {offsets = [0, 32], sizes = [16, 32], strides = [1, 1]} : vector<16x64xf32> to vector<16x32xf32>
    %87 = vector.extract_strided_slice %6 {offsets = [12, 0], sizes = [1, 32], strides = [1, 1]} : vector<24x32xf32> to vector<1x32xf32>
    %88 = vector.broadcast %87 : vector<1x32xf32> to vector<16x32xf32>
    %89 = arith.addf %86, %88 : vector<16x32xf32>
    %cst_24 = arith.constant dense<0.000000e+00> : vector<16x64xf32>
    %90 = tpu.matmul %1, %12, %cst_24 {dimension_numbers = #tpu.dot_dimension_numbers<[1], [0], [0], [1], [0, 0, 1, 1], [], []>} : vector<16x48xbf16>, vector<48x64xbf16>, vector<16x64xf32> -> vector<16x64xf32>
    %91 = vector.extract_strided_slice %90 {offsets = [0, 0], sizes = [16, 32], strides = [1, 1]} : vector<16x64xf32> to vector<16x32xf32>
    %92 = vector.extract_strided_slice %6 {offsets = [7, 0], sizes = [1, 32], strides = [1, 1]} : vector<24x32xf32> to vector<1x32xf32>
    %93 = vector.broadcast %92 : vector<1x32xf32> to vector<16x32xf32>
    %94 = arith.addf %91, %93 : vector<16x32xf32>
    %95 = vector.extract_strided_slice %90 {offsets = [0, 32], sizes = [16, 32], strides = [1, 1]} : vector<16x64xf32> to vector<16x32xf32>
    %96 = vector.extract_strided_slice %6 {offsets = [8, 0], sizes = [1, 32], strides = [1, 1]} : vector<24x32xf32> to vector<1x32xf32>
    %97 = vector.broadcast %96 : vector<1x32xf32> to vector<16x32xf32>
    %98 = arith.addf %95, %97 : vector<16x32xf32>
    %99 = vector.shape_cast %85 : vector<16x32xf32> to vector<2x8x32xf32>
    %100 = arith.truncf %99 : vector<2x8x32xf32> to vector<2x8x32xbf16>
    %101 = vector.shape_cast %94 : vector<16x32xf32> to vector<2x8x32xf32>
    %102 = arith.truncf %101 : vector<2x8x32xf32> to vector<2x8x32xbf16>
    %103 = vector.shape_cast %98 : vector<16x32xf32> to vector<2x8x32xf32>
    %104 = arith.truncf %103 : vector<2x8x32xf32> to vector<2x8x32xbf16>
    "tpu.trace_start"() <{level = 10 : i32, message = "bqh,bkh->bqk"}> : () -> ()
    %cst_25 = arith.constant dense<0.000000e+00> : vector<2x8x8xf32>
    %105 = tpu.matmul %100, %102, %cst_25 {dimension_numbers = #tpu.dot_dimension_numbers<[2], [2], [1], [1], [0, 0, 0, 1, 1, 1], [0], [0]>} : vector<2x8x32xbf16>, vector<2x8x32xbf16>, vector<2x8x8xf32> -> vector<2x8x8xf32>
    "tpu.trace_stop"() : () -> ()
    %cst_26 = arith.constant dense<0xFF800000> : vector<2x8xf32>
    %106 = vector.multi_reduction <maximumf>, %105, %cst_26 [2] : vector<2x8x8xf32> to vector<2x8xf32>
    %107 = vector.shape_cast %106 : vector<2x8xf32> to vector<2x8x1xf32>
    %108 = vector.broadcast %107 : vector<2x8x1xf32> to vector<2x8x8xf32>
    %109 = arith.subf %105, %108 : vector<2x8x8xf32>
    %110 = math.exp %109 : vector<2x8x8xf32>
    %cst_27 = arith.constant dense<0.000000e+00> : vector<2x8xf32>
    %111 = vector.multi_reduction <add>, %110, %cst_27 [2] : vector<2x8x8xf32> to vector<2x8xf32>
    %112 = vector.shape_cast %111 : vector<2x8xf32> to vector<2x8x1xf32>
    %113 = tpu.reciprocal %112 {approx = true} : vector<2x8x1xf32> -> vector<2x8x1xf32>
    %114 = vector.broadcast %113 : vector<2x8x1xf32> to vector<2x8x8xf32>
    %115 = arith.mulf %110, %114 : vector<2x8x8xf32>
    %116 = arith.truncf %115 : vector<2x8x8xf32> to vector<2x8x8xbf16>
    "tpu.trace_start"() <{level = 10 : i32, message = "bqk,bkh->bqh"}> : () -> ()
    %cst_28 = arith.constant dense<0.000000e+00> : vector<2x8x32xf32>
    %117 = tpu.matmul %116, %104, %cst_28 {dimension_numbers = #tpu.dot_dimension_numbers<[2], [1], [1], [2], [0, 0, 0, 1, 1, 2], [0], [0]>} : vector<2x8x8xbf16>, vector<2x8x32xbf16>, vector<2x8x32xf32> -> vector<2x8x32xf32>
    "tpu.trace_stop"() : () -> ()
    %118 = vector.shape_cast %117 : vector<2x8x32xf32> to vector<16x32xf32>
    %119 = vector.extract_strided_slice %6 {offsets = [9, 0], sizes = [1, 32], strides = [1, 1]} : vector<24x32xf32> to vector<1x32xf32>
    %120 = vector.extract_strided_slice %6 {offsets = [10, 0], sizes = [1, 32], strides = [1, 1]} : vector<24x32xf32> to vector<1x32xf32>
    %121 = vector.extract_strided_slice %6 {offsets = [11, 0], sizes = [1, 32], strides = [1, 1]} : vector<24x32xf32> to vector<1x32xf32>
    %122 = arith.truncf %118 : vector<16x32xf32> to vector<16x32xbf16>
    %cst_29 = arith.constant dense<0.000000e+00> : vector<16x32xf32>
    %123 = tpu.matmul %122, %10, %cst_29 {dimension_numbers = #tpu.dot_dimension_numbers<[1], [0], [0], [1], [0, 0, 1, 1], [], []>} : vector<16x32xbf16>, vector<32x32xbf16>, vector<16x32xf32> -> vector<16x32xf32>
    %124 = vector.broadcast %119 : vector<1x32xf32> to vector<16x32xf32>
    %125 = arith.addf %123, %124 : vector<16x32xf32>
    %126 = arith.addf %125, %79 : vector<16x32xf32>
    %cst_30 = arith.constant dense<0.000000e+00> : vector<16xf32>
    %127 = vector.multi_reduction <add>, %126, %cst_30 [1] : vector<16x32xf32> to vector<16xf32>
    %128 = vector.shape_cast %127 : vector<16xf32> to vector<16x1xf32>
    %cst_31 = arith.constant 3.200000e+01 : f32
    %129 = vector.broadcast %cst_31 : f32 to vector<16x1xf32>
    %130 = arith.divf %128, %129 : vector<16x1xf32>
    %131 = vector.broadcast %130 : vector<16x1xf32> to vector<16x32xf32>
    %132 = arith.subf %126, %131 : vector<16x32xf32>
    %133 = arith.mulf %132, %132 : vector<16x32xf32>
    %cst_32 = arith.constant dense<0.000000e+00> : vector<16xf32>
    %134 = vector.multi_reduction <add>, %133, %cst_32 [1] : vector<16x32xf32> to vector<16xf32>
    %135 = vector.shape_cast %134 : vector<16xf32> to vector<16x1xf32>
    %cst_33 = arith.constant 3.200000e+01 : f32
    %136 = vector.broadcast %cst_33 : f32 to vector<16x1xf32>
    %137 = arith.divf %135, %136 : vector<16x1xf32>
    %138 = vector.broadcast %130 : vector<16x1xf32> to vector<16x32xf32>
    %139 = arith.subf %126, %138 : vector<16x32xf32>
    %cst_34 = arith.constant 9.99999974E-6 : f32
    %140 = vector.broadcast %cst_34 : f32 to vector<16x1xf32>
    %141 = arith.addf %137, %140 : vector<16x1xf32>
    %142 = math.rsqrt %141 : vector<16x1xf32>
    %143 = vector.broadcast %142 : vector<16x1xf32> to vector<16x32xf32>
    %144 = arith.mulf %139, %143 : vector<16x32xf32>
    %145 = vector.broadcast %120 : vector<1x32xf32> to vector<16x32xf32>
    %146 = arith.mulf %144, %145 : vector<16x32xf32>
    %147 = vector.broadcast %121 : vector<1x32xf32> to vector<16x32xf32>
    %148 = arith.addf %146, %147 : vector<16x32xf32>
    %cst_35 = arith.constant dense<0.000000e+00> : vector<16x64xf32>
    %149 = tpu.matmul %2, %13, %cst_35 {dimension_numbers = #tpu.dot_dimension_numbers<[1], [0], [0], [1], [0, 0, 1, 1], [], []>} : vector<16x64xbf16>, vector<64x64xbf16>, vector<16x64xf32> -> vector<16x64xf32>
    %150 = vector.extract_strided_slice %149 {offsets = [0, 0], sizes = [16, 32], strides = [1, 1]} : vector<16x64xf32> to vector<16x32xf32>
    %151 = vector.extract_strided_slice %6 {offsets = [13, 0], sizes = [1, 32], strides = [1, 1]} : vector<24x32xf32> to vector<1x32xf32>
    %152 = vector.broadcast %151 : vector<1x32xf32> to vector<16x32xf32>
    %153 = arith.addf %150, %152 : vector<16x32xf32>
    %154 = vector.extract_strided_slice %149 {offsets = [0, 32], sizes = [16, 32], strides = [1, 1]} : vector<16x64xf32> to vector<16x32xf32>
    %155 = vector.extract_strided_slice %6 {offsets = [14, 0], sizes = [1, 32], strides = [1, 1]} : vector<24x32xf32> to vector<1x32xf32>
    %156 = vector.broadcast %155 : vector<1x32xf32> to vector<16x32xf32>
    %157 = arith.addf %154, %156 : vector<16x32xf32>
    %158 = vector.shape_cast %89 : vector<16x32xf32> to vector<2x8x32xf32>
    %159 = arith.truncf %158 : vector<2x8x32xf32> to vector<2x8x32xbf16>
    %160 = vector.shape_cast %153 : vector<16x32xf32> to vector<2x8x32xf32>
    %161 = arith.truncf %160 : vector<2x8x32xf32> to vector<2x8x32xbf16>
    %162 = vector.shape_cast %157 : vector<16x32xf32> to vector<2x8x32xf32>
    %163 = arith.truncf %162 : vector<2x8x32xf32> to vector<2x8x32xbf16>
    "tpu.trace_start"() <{level = 10 : i32, message = "bqh,bkh->bqk"}> : () -> ()
    %cst_36 = arith.constant dense<0.000000e+00> : vector<2x8x8xf32>
    %164 = tpu.matmul %159, %161, %cst_36 {dimension_numbers = #tpu.dot_dimension_numbers<[2], [2], [1], [1], [0, 0, 0, 1, 1, 1], [0], [0]>} : vector<2x8x32xbf16>, vector<2x8x32xbf16>, vector<2x8x8xf32> -> vector<2x8x8xf32>
    "tpu.trace_stop"() : () -> ()
    %cst_37 = arith.constant dense<0xFF800000> : vector<2x8xf32>
    %165 = vector.multi_reduction <maximumf>, %164, %cst_37 [2] : vector<2x8x8xf32> to vector<2x8xf32>
    %166 = vector.shape_cast %165 : vector<2x8xf32> to vector<2x8x1xf32>
    %167 = vector.broadcast %166 : vector<2x8x1xf32> to vector<2x8x8xf32>
    %168 = arith.subf %164, %167 : vector<2x8x8xf32>
    %169 = math.exp %168 : vector<2x8x8xf32>
    %cst_38 = arith.constant dense<0.000000e+00> : vector<2x8xf32>
    %170 = vector.multi_reduction <add>, %169, %cst_38 [2] : vector<2x8x8xf32> to vector<2x8xf32>
    %171 = vector.shape_cast %170 : vector<2x8xf32> to vector<2x8x1xf32>
    %172 = tpu.reciprocal %171 {approx = true} : vector<2x8x1xf32> -> vector<2x8x1xf32>
    %173 = vector.broadcast %172 : vector<2x8x1xf32> to vector<2x8x8xf32>
    %174 = arith.mulf %169, %173 : vector<2x8x8xf32>
    %175 = arith.truncf %174 : vector<2x8x8xf32> to vector<2x8x8xbf16>
    "tpu.trace_start"() <{level = 10 : i32, message = "bqk,bkh->bqh"}> : () -> ()
    %cst_39 = arith.constant dense<0.000000e+00> : vector<2x8x32xf32>
    %176 = tpu.matmul %175, %163, %cst_39 {dimension_numbers = #tpu.dot_dimension_numbers<[2], [1], [1], [2], [0, 0, 0, 1, 1, 2], [0], [0]>} : vector<2x8x8xbf16>, vector<2x8x32xbf16>, vector<2x8x32xf32> -> vector<2x8x32xf32>
    "tpu.trace_stop"() : () -> ()
    %177 = vector.shape_cast %176 : vector<2x8x32xf32> to vector<16x32xf32>
    %178 = vector.extract_strided_slice %6 {offsets = [15, 0], sizes = [1, 32], strides = [1, 1]} : vector<24x32xf32> to vector<1x32xf32>
    %179 = vector.extract_strided_slice %6 {offsets = [16, 0], sizes = [1, 32], strides = [1, 1]} : vector<24x32xf32> to vector<1x32xf32>
    %180 = vector.extract_strided_slice %6 {offsets = [17, 0], sizes = [1, 32], strides = [1, 1]} : vector<24x32xf32> to vector<1x32xf32>
    %181 = arith.truncf %177 : vector<16x32xf32> to vector<16x32xbf16>
    %cst_40 = arith.constant dense<0.000000e+00> : vector<16x32xf32>
    %182 = tpu.matmul %181, %11, %cst_40 {dimension_numbers = #tpu.dot_dimension_numbers<[1], [0], [0], [1], [0, 0, 1, 1], [], []>} : vector<16x32xbf16>, vector<32x32xbf16>, vector<16x32xf32> -> vector<16x32xf32>
    %183 = vector.broadcast %178 : vector<1x32xf32> to vector<16x32xf32>
    %184 = arith.addf %182, %183 : vector<16x32xf32>
    %185 = arith.addf %184, %79 : vector<16x32xf32>
    %cst_41 = arith.constant dense<0.000000e+00> : vector<16xf32>
    %186 = vector.multi_reduction <add>, %185, %cst_41 [1] : vector<16x32xf32> to vector<16xf32>
    %187 = vector.shape_cast %186 : vector<16xf32> to vector<16x1xf32>
    %cst_42 = arith.constant 3.200000e+01 : f32
    %188 = vector.broadcast %cst_42 : f32 to vector<16x1xf32>
    %189 = arith.divf %187, %188 : vector<16x1xf32>
    %190 = vector.broadcast %189 : vector<16x1xf32> to vector<16x32xf32>
    %191 = arith.subf %185, %190 : vector<16x32xf32>
    %192 = arith.mulf %191, %191 : vector<16x32xf32>
    %cst_43 = arith.constant dense<0.000000e+00> : vector<16xf32>
    %193 = vector.multi_reduction <add>, %192, %cst_43 [1] : vector<16x32xf32> to vector<16xf32>
    %194 = vector.shape_cast %193 : vector<16xf32> to vector<16x1xf32>
    %cst_44 = arith.constant 3.200000e+01 : f32
    %195 = vector.broadcast %cst_44 : f32 to vector<16x1xf32>
    %196 = arith.divf %194, %195 : vector<16x1xf32>
    %197 = vector.broadcast %189 : vector<16x1xf32> to vector<16x32xf32>
    %198 = arith.subf %185, %197 : vector<16x32xf32>
    %cst_45 = arith.constant 9.99999974E-6 : f32
    %199 = vector.broadcast %cst_45 : f32 to vector<16x1xf32>
    %200 = arith.addf %196, %199 : vector<16x1xf32>
    %201 = math.rsqrt %200 : vector<16x1xf32>
    %202 = vector.broadcast %201 : vector<16x1xf32> to vector<16x32xf32>
    %203 = arith.mulf %198, %202 : vector<16x32xf32>
    %204 = vector.broadcast %179 : vector<1x32xf32> to vector<16x32xf32>
    %205 = arith.mulf %203, %204 : vector<16x32xf32>
    %206 = vector.broadcast %180 : vector<1x32xf32> to vector<16x32xf32>
    %207 = arith.addf %205, %206 : vector<16x32xf32>
    %208 = arith.truncf %148 : vector<16x32xf32> to vector<16x32xbf16>
    %cst_46 = arith.constant dense<0.000000e+00> : vector<16x32xf32>
    %209 = tpu.matmul %208, %14, %cst_46 {dimension_numbers = #tpu.dot_dimension_numbers<[1], [0], [0], [1], [0, 0, 1, 1], [], []>} : vector<16x32xbf16>, vector<32x32xbf16>, vector<16x32xf32> -> vector<16x32xf32>
    %210 = arith.truncf %207 : vector<16x32xf32> to vector<16x32xbf16>
    %cst_47 = arith.constant dense<0.000000e+00> : vector<16x32xf32>
    %211 = tpu.matmul %210, %15, %cst_47 {dimension_numbers = #tpu.dot_dimension_numbers<[1], [0], [0], [1], [0, 0, 1, 1], [], []>} : vector<16x32xbf16>, vector<32x32xbf16>, vector<16x32xf32> -> vector<16x32xf32>
    %212 = arith.addf %209, %211 : vector<16x32xf32>
    %213 = vector.extract_strided_slice %6 {offsets = [18, 0], sizes = [1, 32], strides = [1, 1]} : vector<24x32xf32> to vector<1x32xf32>
    %214 = vector.broadcast %213 : vector<1x32xf32> to vector<16x32xf32>
    %215 = arith.addf %212, %214 : vector<16x32xf32>
    %216 = arith.negf %215 : vector<16x32xf32>
    %217 = math.exp %216 : vector<16x32xf32>
    %cst_48 = arith.constant 1.000000e+00 : f32
    %218 = vector.broadcast %cst_48 : f32 to vector<16x32xf32>
    %219 = arith.addf %218, %217 : vector<16x32xf32>
    %220 = arith.divf %218, %219 : vector<16x32xf32>
    %221 = arith.mulf %220, %148 : vector<16x32xf32>
    %cst_49 = arith.constant 1.000000e+00 : f32
    %222 = vector.broadcast %cst_49 : f32 to vector<16x32xf32>
    %223 = arith.subf %222, %220 : vector<16x32xf32>
    %224 = arith.mulf %223, %207 : vector<16x32xf32>
    %225 = arith.addf %221, %224 : vector<16x32xf32>
    %c0_50 = arith.constant 0 : index
    %c0_51 = arith.constant 0 : index
    %226 = vector.load %arg7[%c0_50, %c0_51] : memref<16x32xf32, #tpu.memory_space<vmem>>, vector<16x32xf32>
    tpu.vector_store %arg7[%c0_50, %c0_51], %225 {strides = array<i32>} : memref<16x32xf32, #tpu.memory_space<vmem>>, vector<16x32xf32>,
    return
  }
}

</mosaic_0001>

<bundles_post_ra>
// kernel: tpu_custom_call.1
= control target key start
LH: loop header
LB: loop body
LE: loop exit
PB: predicated region body
PF: predicated region fallthrough
CT: control target
= control target key end

     0   :  { %s1481_s0 = inlined_call_operand.vmem [shape: f32[16,32], index: 0, kind: input, shape index: {}]   ;;  %s1482_s1 = inlined_call_operand.vmem [shape: bf16[16,48], index: 1, kind: input, shape index: {}]   ;;  %s1483_s2 = inlined_call_operand.vmem [shape: bf16[16,64], index: 2, kind: input, shape index: {}]   ;;  %s1484_s3 = inlined_call_operand.vmem [shape: bf16[32,256], index: 3, kind: input, shape index: {}]   ;;  %s1485_s4 = inlined_call_operand.vmem [shape: bf16[112,64], index: 4, kind: input, shape index: {}]   ;;  %s1486_s5 = inlined_call_operand.vmem [shape: bf16[64,32], index: 5, kind: input, shape index: {}]   ;;  %s1487_s6 = inlined_call_operand.vmem [shape: f32[24,32], index: 6, kind: input, shape index: {}]   ;;  %s1488_s7 = inlined_call_operand.hbm [shape: f32[16,32], index: 7, kind: output, shape index: {}]  }
   0x1   :  { %v998_v0 = vld [vmem:[%s1484_s3 + $0x10] sm:$0xf]  ;;  %v1088_v1 = vld [vmem:[%s1484_s3 + $0x14] sm:$0xf0]  ;;  %v994_v2 = vld [vmem:[%s1484_s3] sm:$0xf] }
   0x2   :  { %v1235_v3 = vor.u32 %v1088_v1, %v998_v0  ;;  %v1086_v4 = vld [vmem:[%s1484_s3 + $0x4] sm:$0xf0]  ;;  %v1243_v5 = vld [vmem:[%s1487_s6] sm:$0xff] }
   0x3   :  { %12 = vsyncpa [#allocation3], 0  ;;  %v995_v6 = vor.u32 %v1086_v4, %v994_v2  ;;  %v1249_v7 = vld [vmem:[%s1481_s0] sm:$0xff]  ;;  %v1254_v8 = vld [vmem:[%s1481_s0 + $0x8] sm:$0xff]  ;;  %v97_v9 = vperm.slane %v1243_v5, 1  ;;  %v104_v10 = vperm.slane %v1243_v5, 2 }
   0x4   :  { %86 = vmatpush.bf16.msra.mxu0 %v1235_v3  ;;  %s1179_s15 = smov 32   ;;  %s1180_s16 = smov 64   ;;  %v63_v11 = vpack.c.bf16 %v1254_v8, %v1249_v7  ;;  %vm76_vm0 = vcmask 261120   ;;  %v94_v23 = vperm.slane %v1243_v5, 0  ;;  %vm165_vm1 = vcmask 64512  }
   0x5   :  { %99 = vrot.lane.b32.xlu0 %v97_v9, %s1179_s15  ;;  %106 = vrot.lane.b32.xlu2 %v104_v10, %s1180_s16  ;;  %s1181_s0 = smov 96   ;;  %vm198_vm2 = vcmask 1043456   ;;  %vm382_vm4 = vcmask 392192   ;;  %vm632_vm11 = vcmask 523264   ;;  %s980_s29 = sshll.u32 %s1488_s7, 4  ;;  %s981_s29 = int_to_ptr.hbm [resolvable:$true] %s980_s29 }
   0x6   :  { %s1184_s30 = smov 128  }
   0x8   :  { %87 = vmatpush.bf16.msra.mxu0 %v995_v6 }
   0xb   :  { %1000 = vmatmul.msk.bf16.vlgmr.msra.gmra.mxu0 %vm76_vm0, %v63_v11 }
  0x5f   :  { %v107_v38 = vpop.permute.xlu2 %106 }
  0x77   :  { %v100_v12 = vpop.permute.xlu0 %99 }
  0x88   :  { %v89_v13 = vpop.f32.mrf.mxu0 }
  0x89   :  { %v102_v14 = vadd.f32 %v100_v12, %v89_v13  ;;  %v95_v26 = vadd.f32 %v94_v23, %v89_v13  ;;  %v109_v39 = vadd.f32 %v107_v38, %v89_v13 }
  0x8b   :  { %v113_v15 = vpack.c.bf16 %v102_v14, %v102_v14  ;;  %v111_v27 = vpack.c.bf16 %v95_v26, %v95_v26  ;;  %v115_v40 = vpack.c.bf16 %v109_v39, %v109_v39  ;;  %v1091_v39 = vld [vmem:[%s1485_s4 + $0x10] sm:$0xff] }
  0x8d   :  { %v118_v16 = vunpack.c.l.b16 %v113_v15  ;;  %v191_v41 = vunpack.c.l.b16 %v115_v40  ;;  %v240_v15 = vperm.slane %v1243_v5, 3  ;;  %v1090_v40 = vld [vmem:[%s1485_s4 + $0x8] sm:$0xff] }
  0x8f   :  { %v119_v17 = vpack.c.b16 %v118_v16, %v118_v16  ;;  %v192_v42 = vpack.c.b16 %v191_v41, %v191_v41  ;;  %v1089_v41 = vld [vmem:[%s1485_s4] sm:$0xff] }
  0x90   :  { %v91_v18 = vpop.f32.mrf.mxu0 }
  0x91   :  { %120 = vrot.lane.b32.xlu0 %v119_v17, %s1181_s0  ;;  %v103_v19 = vadd.f32 %v100_v12, %v91_v18  ;;  %v96_v30 = vadd.f32 %v94_v23, %v91_v18  ;;  %v110_v51 = vadd.f32 %v107_v38, %v91_v18 }
  0x93   :  { %v114_v20 = vpack.c.bf16 %v103_v19, %v103_v19  ;;  %v112_v31 = vpack.c.bf16 %v96_v30, %v96_v30  ;;  %v116_v53 = vpack.c.bf16 %v110_v51, %v110_v51 }
  0x95   :  { %v142_v21 = vunpack.c.l.b16 %v114_v20  ;;  %v216_v57 = vunpack.c.l.b16 %v116_v53 }
  0x97   :  { %v143_v22 = vpack.c.b16 %v142_v21, %v142_v21  ;;  %v217_v58 = vpack.c.b16 %v216_v57, %v216_v57 }
  0x99   :  { %144 = vrot.lane.b32.xlu1 %v143_v22, %s1181_s0 }
 0x103   :  { %v121_v24 = vpop.permute.xlu0 %120 }
 0x104   :  { %v126_v25 = vsel %vm76_vm0, %v121_v24, 0  ;;  %v1182_v24 = vmov 32.0  }
 0x105   :  { %135 = vmatpush.bf16.xpose.msra.mxu1 %v126_v25 }
 0x10b   :  { %v145_v28 = vpop.permute.xlu1 %144 }
 0x10c   :  { %1001 = vmatmul.msk.bf16.vlgmr.msra.gmra.mxu1 %vm76_vm0, %v111_v27  ;;  %v150_v29 = vsel %vm76_vm0, %v145_v28, 0 }
 0x10d   :  { %159 = vmatpush.bf16.xpose.msra.mxu2 %v150_v29 }
 0x114   :  { %1002 = vmatmul.msk.bf16.vlgmr.msra.gmra.mxu2 %vm76_vm0, %v112_v31 }
 0x115   :  { %391 = vmatpush.bf16.msrb.mxu2 %v1091_v39 }
 0x119   :  { %392 = vmatpush.bf16.msrb.mxu2 %v1090_v40 }
 0x11d   :  { %393 = vmatpush.bf16.msrb.mxu2 %v1089_v41 }
 0x189   :  { %v137_v32 = vpop.f32.mrf.mxu1 }
 0x18a   :  { %v166_v33 = vsel %vm165_vm1, %v137_v32, -inf }
 0x18b   :  { %167 = vmax.xlane.f32.xlu1 %v166_v33 }
 0x191   :  { %v139_v34 = vpop.f32.mrf.mxu1 }
 0x197   :  { %v161_v35 = vpop.f32.mrf.mxu2 }
 0x198   :  { %v169_v36 = vsel %vm165_vm1, %v161_v35, -inf }
 0x199   :  { %170 = vmax.xlane.f32.xlu2 %v169_v36 }
 0x19f   :  { %v163_v37 = vpop.f32.mrf.mxu2 }
 0x1b1   :  { %193 = vrot.lane.b32.xlu2 %v192_v42, %s1180_s16  ;;  %v1083_v42 = vld [vmem:[%s1482_s1] sm:$0xff]  ;;  %s1185_s1 = smov 8  }
 0x1b2   :  { %1031 = vmatmul.msk.bf16.vlgmr.msrb.gmra.mxu2 %vm382_vm4, %v1083_v42 }
 0x1b9   :  { %241 = vrot.lane.b32.xlu2 %v995_v6, %s1179_s15 }
 0x1fe   :  { %v168_v43 = vpop.xlane.xlu1 %167 }
 0x1ff   :  { %v172_v44 = vsub.f32 %v137_v32, %v168_v43  ;;  %v1087_v43 = vld [vmem:[%s1484_s3 + $0x14] sm:$0xf] }
 0x201   :  { %v174_v45 = vmul.f32 1.442695, %v172_v44  ;;  %v1010_v44 = vld [vmem:[%s1484_s3 + $0x18] sm:$0xf0] }
 0x203   :  { %1107 = vpow2.f32 %v174_v45  ;;  %v1313_v45 = vor.u32 %v1087_v43, %v1010_v44 }
 0x205   :  { %341 = vmatpush.bf16.msrb.mxu1 %v1313_v45 }
 0x209   :  { %v1108_v46 = vpop.eup %1107 }
 0x20a   :  { %v178_v47 = vsel %vm165_vm1, %v1108_v46, 0.0 }
 0x20b   :  { %179 = vadd.xlane.f32.xlu0 %v178_v47 }
 0x20c   :  { %v171_v48 = vpop.xlane.xlu2 %170 }
 0x20d   :  { %v173_v49 = vsub.f32 %v161_v35, %v171_v48  ;;  %v1085_v48 = vld [vmem:[%s1484_s3 + $0x4] sm:$0xf] }
 0x20f   :  { %v176_v50 = vmul.f32 1.442695, %v173_v49  ;;  %v1006_v49 = vld [vmem:[%s1484_s3 + $0x8] sm:$0xf0] }
 0x211   :  { %1109 = vpow2.f32 %v176_v50  ;;  %v1323_v50 = vor.u32 %v1085_v48, %v1006_v49  ;;  %v1095_v48 = vld [vmem:[%s1485_s4 + $0x30] sm:$0xff]  ;;  %v1094_v49 = vld [vmem:[%s1485_s4 + $0x28] sm:$0xff] }
 0x213   :  { %342 = vmatpush.bf16.msrb.mxu1 %v1323_v50 }
 0x214   :  { %v194_v52 = vpop.permute.xlu2 %193 }
 0x215   :  { %v200_v54 = vsel %vm198_vm2, %v194_v52, 0  ;;  %v1329_v52 = vld [vmem:[%s1487_s6 + $0x8] sm:$0xff] }
 0x216   :  { %209 = vmatpush.bf16.msra.mxu3 %v200_v54  ;;  %v403_v54 = vperm.slane %v1329_v52, 0 }
 0x217   :  { %v1110_v55 = vpop.eup %1109 }
 0x218   :  { %v181_v56 = vsel %vm165_vm1, %v1110_v55, 0.0 }
 0x219   :  { %182 = vadd.xlane.f32.xlu1 %v181_v56 }
 0x21f   :  { %218 = vrot.lane.b32.xlu0 %v217_v58, %s1180_s16 }
 0x232   :  { %243 = vrot.lane.b32.xlu1 %v1235_v3, %s1179_s15  ;;  %v242_v3 = vpop.permute.xlu2 %241 }
 0x27e   :  { %v180_v59 = vpop.xlane.xlu0 %179 }
 0x27f   :  { %1111 = vrcp.f32 %v180_v59 }
 0x285   :  { %v1112_v60 = vpop.eup %1111 }
 0x286   :  { %v186_v61 = vmul.f32 %v1112_v60, %v1108_v46 }
 0x288   :  { %v188_v62 = vpack.c.bf16 %v186_v61, %v186_v61 }
 0x28a   :  { %1003 = vmatmul.msk.bf16.vlgmr.msra.gmra.mxu3 %vm165_vm1, %v188_v62 }
 0x28c   :  { %v183_v63 = vpop.xlane.xlu1 %182 }
 0x28d   :  { %1113 = vrcp.f32 %v183_v63 }
 0x28e   :  { %1115 = vrcp.f32 %v1182_v24 }
 0x291   :  { %v219_v0 = vpop.permute.xlu0 %218 }
 0x292   :  { %v224_v1 = vsel %vm198_vm2, %v219_v0, 0 }
 0x293   :  { %v1114_v2 = vpop.eup %1113  ;;  %233 = vmatpush.bf16.msrb.mxu3 %v224_v1 }
 0x294   :  { %v187_v4 = vmul.f32 %v1114_v2, %v1110_v55  ;;  %v1116_v25 = vpop.eup %1115 }
 0x295   :  { %v273_v26 = vmul.f32 32.0, %v1116_v25  ;;  %vm277_vm3 = vweird.f32 %v1116_v25 }
 0x296   :  { %v189_v6 = vpack.c.bf16 %v187_v4, %v187_v4 }
 0x297   :  { %v274_v27 = vsub.f32 1.0, %v273_v26 }
 0x299   :  { %v275_v28 = vmul.f32 %v1116_v25, %v274_v27 }
 0x29a   :  { %1004 = vmatmul.msk.bf16.vlgmr.msrb.gmra.mxu3 %vm165_vm1, %v189_v6 }
 0x29b   :  { %v276_v29 = vadd.f32 %v1116_v25, %v275_v28 }
 0x29d   :  { %v1289_v30 = vsel %vm277_vm3, %v1116_v25, %v276_v29 }
 0x2a4   :  { %v244_v9 = vpop.permute.xlu1 %243 }
 0x2a5   :  { %256 = vmatpush.bf16.msrb.mxu0 %v244_v9  ;;  %v317_v9 = vperm.slane %v1243_v5, 4 }
 0x2a9   :  { %257 = vmatpush.bf16.msrb.mxu0 %v242_v3 }
 0x30d   :  { %v211_v10 = vpop.f32.mrf.mxu3 }
 0x315   :  { %v213_v11 = vpop.f32.mrf.mxu3 }
 0x31d   :  { %v235_v12 = vpop.f32.mrf.mxu3 }
 0x31e   :  { %v239_v13 = vpack.c.bf16 %v235_v12, %v211_v10 }
 0x320   :  { %1005 = vmatmul.msk.bf16.vlgmr.msrb.gmra.mxu0 %vm76_vm0, %v239_v13 }
 0x325   :  { %v237_v14 = vpop.f32.mrf.mxu3 }
 0x326   :  { %v320_v14 = vperm.slane %v1243_v5, 5 }
 0x39d   :  { %v259_v16 = vpop.f32.mrf.mxu0 }
 0x39e   :  { %v260_v17 = vadd.f32 %v259_v16, %v240_v15 }
 0x3a0   :  { %v264_v18 = vadd.f32 %v260_v17, %v1249_v7 }
 0x3a2   :  { %v266_v19 = vsel %vm76_vm0, %v264_v18, 0.0 }
 0x3a3   :  { %267 = vadd.xlane.f32.xlu0 %v266_v19  ;;  %v400_v19 = vperm.slane %v1243_v5, 7 }
 0x3a5   :  { %v261_v20 = vpop.f32.mrf.mxu0 }
 0x3a6   :  { %v262_v21 = vadd.f32 %v261_v20, %v240_v15  ;;  %v395_v20 = vpop.f32.mrf.mxu2 }
 0x3a8   :  { %v265_v22 = vadd.f32 %v262_v21, %v1254_v8  ;;  %v401_v21 = vadd.f32 %v400_v19, %v395_v20 }
 0x3aa   :  { %v269_v23 = vsel %vm76_vm0, %v265_v22, 0.0 }
 0x3ab   :  { %270 = vadd.xlane.f32.xlu2 %v269_v23 }
 0x3ae   :  { %v1347_v25 = vpop.f32.mrf.mxu2 }
 0x3af   :  { %v402_v27 = vadd.f32 %v400_v19, %v1347_v25  ;;  %v653_v19 = vperm.slane %v1329_v52, 6 }
 0x3b1   :  { %v413_v29 = vpack.c.bf16 %v402_v27, %v402_v27 }
 0x416   :  { %v268_v7 = vpop.xlane.xlu0 %267 }
 0x417   :  { %v279_v31 = vmul.f32 %v1289_v30, %v268_v7 }
 0x419   :  { %v281_v32 = vsub.f32 %v264_v18, %v279_v31  ;;  %v439_v31 = vsel %vm76_vm0, %v413_v29, 0 }
 0x41a   :  { %448 = vmatpush.bf16.xpose.msra.mxu0 %v439_v31 }
 0x41b   :  { %v283_v33 = vmul.f32 %v281_v32, %v281_v32 }
 0x41d   :  { %v285_v8 = vsel %vm76_vm0, %v283_v33, 0.0  ;;  %v349_v33 = vperm.slane %v1243_v5, 6 }
 0x41e   :  { %v271_v34 = vpop.xlane.xlu2 %270  ;;  %286 = vadd.xlane.f32.xlu1 %v285_v8 }
 0x41f   :  { %v280_v35 = vmul.f32 %v1289_v30, %v271_v34 }
 0x421   :  { %v282_v36 = vsub.f32 %v265_v22, %v280_v35  ;;  %v412_v22 = vpack.c.bf16 %v401_v21, %v401_v21 }
 0x422   :  { %640 = vmatpush.bf16.msrb.mxu0 %v1095_v48 }
 0x423   :  { %v284_v37 = vmul.f32 %v282_v36, %v282_v36  ;;  %v420_v23 = vsel %vm76_vm0, %v412_v22, 0 }
 0x424   :  { %429 = vmatpush.bf16.xpose.msra.mxu3 %v420_v23 }
 0x425   :  { %v288_v38 = vsel %vm76_vm0, %v284_v37, 0.0 }
 0x426   :  { %289 = vadd.xlane.f32.xlu0 %v288_v38  ;;  %641 = vmatpush.bf16.msrb.mxu0 %v1094_v49 }
 0x43a   :  { %405 = vrot.lane.b32.xlu0 %v403_v54, %s1179_s15  ;;  %v1084_v54 = vld [vmem:[%s1483_s2] sm:$0xff] }
 0x491   :  { %v287_v46 = vpop.xlane.xlu1 %286 }
 0x492   :  { %v291_v47 = vmul.f32 %v287_v46, %v1289_v30 }
 0x494   :  { %v293_v51 = vadd.f32 1e-05, %v291_v47  ;;  %v352_v47 = vperm.slane %v1329_v52, 4 }
 0x496   :  { %1117 = vrsqrt.f32 %v293_v51  ;;  %vm301_vm6 = vweird.f32 %v293_v51 }
 0x499   :  { %v290_v53 = vpop.xlane.xlu0 %289 }
 0x49a   :  { %v292_v55 = vmul.f32 %v290_v53, %v1289_v30  ;;  %v1092_v53 = vld [vmem:[%s1485_s4 + $0x18] sm:$0xff] }
 0x49c   :  { %v1118_v56 = vpop.eup %1117  ;;  %v294_v57 = vadd.f32 1e-05, %v292_v55 }
 0x49d   :  { %v296_v58 = vmul.f32 %v1118_v56, %v293_v51  ;;  %vm302_vm5 = vweird.f32 %v1118_v56  ;;  %v1093_v51 = vld [vmem:[%s1485_s4 + $0x20] sm:$0xff] }
 0x49e   :  { %1119 = vrsqrt.f32 %v294_v57  ;;  %vm303_vm7 = vmor %vm301_vm6, %vm302_vm5  ;;  %vm311_vm9 = vweird.f32 %v294_v57  ;;  %642 = vmatpush.bf16.msrb.mxu0 %v1093_v51 }
 0x49f   :  { %v297_v59 = vmul.f32 %v1118_v56, %v296_v58 }
 0x4a1   :  { %v298_v60 = vmul.f32 0.5, %v297_v59 }
 0x4a2   :  { %643 = vmatpush.bf16.msrb.mxu0 %v1092_v53 }
 0x4a3   :  { %v299_v61 = vsub.f32 1.5, %v298_v60 }
 0x4a4   :  { %v1120_v62 = vpop.eup %1119 }
 0x4a5   :  { %v300_v63 = vmul.f32 %v1118_v56, %v299_v61  ;;  %v306_v0 = vmul.f32 %v1120_v62, %v294_v57  ;;  %vm312_vm8 = vweird.f32 %v1120_v62 }
 0x4a6   :  { %vm313_vm10 = vmor %vm311_vm9, %vm312_vm8 }
 0x4a7   :  { %v307_v1 = vmul.f32 %v1120_v62, %v306_v0  ;;  %v304_v2 = vsel %vm303_vm7, %v1118_v56, %v300_v63 }
 0x4a8   :  { %v315_v3 = vmul.f32 %v304_v2, %v281_v32 }
 0x4a9   :  { %v308_v4 = vmul.f32 0.5, %v307_v1 }
 0x4aa   :  { %v318_v12 = vmul.f32 %v317_v9, %v315_v3 }
 0x4ab   :  { %v309_v6 = vsub.f32 1.5, %v308_v4 }
 0x4ac   :  { %v1336_v16 = vadd.f32 %v320_v14, %v318_v12  ;;  %v1345_v24 = vpop.permute.xlu0 %405 }
 0x4ad   :  { %v310_v10 = vmul.f32 %v1120_v62, %v309_v6  ;;  %v408_v26 = vadd.f32 %v1345_v24, %v395_v20  ;;  %v650_v20 = vperm.slane %v1329_v52, 5 }
 0x4af   :  { %v314_v11 = vsel %vm313_vm10, %v1120_v62, %v310_v10  ;;  %v414_v28 = vpack.c.bf16 %v408_v26, %v408_v26 }
 0x4b0   :  { %v316_v13 = vmul.f32 %v314_v11, %v282_v36 }
 0x4b1   :  { %v479_v7 = vunpack.c.l.b16 %v414_v28 }
 0x4b2   :  { %v319_v15 = vmul.f32 %v317_v9, %v316_v13  ;;  %v409_v13 = vadd.f32 %v1345_v24, %v1347_v25 }
 0x4b3   :  { %v480_v32 = vpack.c.b16 %v479_v7, %v479_v7 }
 0x4b4   :  { %v1338_v17 = vadd.f32 %v320_v14, %v319_v15  ;;  %v415_v14 = vpack.c.bf16 %v409_v13, %v409_v13 }
 0x4b5   :  { %481 = vrot.lane.b32.xlu0 %v480_v32, %s1181_s0 }
 0x4b6   :  { %v323_v18 = vpack.c.bf16 %v1338_v17, %v1336_v16  ;;  %v503_v15 = vunpack.c.l.b16 %v415_v14 }
 0x4b8   :  { %1014 = vmatmul.msk.bf16.vlgmr.msrb.gmra.mxu1 %vm76_vm0, %v323_v18  ;;  %v504_v18 = vpack.c.b16 %v503_v15, %v503_v15 }
 0x527   :  { %v482_v39 = vpop.permute.xlu0 %481 }
 0x528   :  { %v487_v40 = vsel %vm198_vm2, %v482_v39, 0 }
 0x529   :  { %496 = vmatpush.bf16.msra.mxu1 %v487_v40 }
 0x535   :  { %v344_v8 = vpop.f32.mrf.mxu1 }
 0x536   :  { %v350_v34 = vadd.f32 %v349_v33, %v344_v8 }
 0x538   :  { %v410_v35 = vpack.c.bf16 %v350_v34, %v350_v34 }
 0x53a   :  { %1032 = vmatmul.msk.bf16.vlgmr.msra.gmra.mxu3 %vm76_vm0, %v410_v35 }
 0x53d   :  { %v346_v36 = vpop.f32.mrf.mxu1 }
 0x53e   :  { %v351_v37 = vadd.f32 %v349_v33, %v346_v36 }
 0x540   :  { %v411_v38 = vpack.c.bf16 %v351_v37, %v351_v37 }
 0x542   :  { %1033 = vmatmul.msk.bf16.vlgmr.msra.gmra.mxu0 %vm76_vm0, %v411_v38 }
 0x552   :  { %1057 = vmatmul.msk.bf16.vlgmr.msrb.gmra.mxu0 %vm632_vm11, %v1084_v54 }
 0x5bd   :  { %v431_v41 = vpop.f32.mrf.mxu3 }
 0x5be   :  { %v454_v42 = vsel %vm165_vm1, %v431_v41, -inf }
 0x5bf   :  { %455 = vmax.xlane.f32.xlu2 %v454_v42  ;;  %v450_v43 = vpop.f32.mrf.mxu0 }
 0x5c0   :  { %v457_v5 = vsel %vm165_vm1, %v450_v43, -inf }
 0x5c1   :  { %458 = vmax.xlane.f32.xlu1 %v457_v5 }
 0x5c5   :  { %v433_v44 = vpop.f32.mrf.mxu3 }
 0x5c7   :  { %v452_v46 = vpop.f32.mrf.mxu0 }
 0x5cf   :  { %v645_v21 = vpop.f32.mrf.mxu0 }
 0x5d0   :  { %v651_v22 = vadd.f32 %v650_v20, %v645_v21 }
 0x5d2   :  { %v662_v23 = vpack.c.bf16 %v651_v22, %v651_v22 }
 0x5d4   :  { %v675_v24 = vsel %vm76_vm0, %v662_v23, 0 }
 0x5d5   :  { %684 = vmatpush.bf16.xpose.msrb.mxu1 %v675_v24 }
 0x5d7   :  { %354 = vrot.lane.b32.xlu2 %v352_v47, %s1179_s15  ;;  %v1392_v7 = vpop.f32.mrf.mxu0 }
 0x5d8   :  { %v652_v31 = vadd.f32 %v650_v20, %v1392_v7 }
 0x632   :  { %v456_v55 = vpop.xlane.xlu2 %455 }
 0x633   :  { %v460_v56 = vsub.f32 %v431_v41, %v456_v55 }
 0x634   :  { %v459_v57 = vpop.xlane.xlu1 %458 }
 0x635   :  { %v462_v58 = vmul.f32 1.442695, %v460_v56  ;;  %v461_v59 = vsub.f32 %v450_v43, %v459_v57 }
 0x637   :  { %1121 = vpow2.f32 %v462_v58  ;;  %v464_v60 = vmul.f32 1.442695, %v461_v59 }
 0x639   :  { %1123 = vpow2.f32 %v464_v60 }
 0x63a   :  { %v355_v61 = vpop.permute.xlu2 %354 }
 0x63b   :  { %v357_v62 = vadd.f32 %v355_v61, %v344_v8  ;;  %v358_v63 = vadd.f32 %v355_v61, %v346_v36  ;;  %v663_v8 = vpack.c.bf16 %v652_v31, %v652_v31 }
 0x63d   :  { %v1122_v0 = vpop.eup %1121  ;;  %v660_v1 = vpack.c.bf16 %v357_v62, %v357_v62  ;;  %v661_v2 = vpack.c.bf16 %v358_v63, %v358_v63  ;;  %v699_v36 = vsel %vm76_vm0, %v663_v8, 0 }
 0x63e   :  { %v466_v4 = vsel %vm165_vm1, %v1122_v0, 0.0 }
 0x63f   :  { %v667_v6 = vunpack.c.l.b16 %v660_v1  ;;  %v691_v9 = vunpack.c.l.b16 %v661_v2  ;;  %467 = vadd.xlane.f32.xlu1 %v466_v4  ;;  %v1124_v11 = vpop.eup %1123  ;;  %v527_v1 = vperm.slane %v1329_v52, 1 }
 0x640   :  { %v469_v12 = vsel %vm165_vm1, %v1124_v11, 0.0 }
 0x641   :  { %v668_v3 = vpack.c.b16 %v667_v6, %v667_v6  ;;  %v692_v10 = vpack.c.b16 %v691_v9, %v691_v9 }
 0x643   :  { %693 = vrot.lane.b32.xlu0 %v692_v10, %s1181_s0  ;;  %669 = vrot.lane.b32.xlu2 %v668_v3, %s1181_s0 }
 0x647   :  { %470 = vadd.xlane.f32.xlu1 %v469_v12 }
 0x660   :  { %505 = vrot.lane.b32.xlu1 %v504_v18, %s1181_s0 }
 0x668   :  { %655 = vrot.lane.b32.xlu1 %v653_v19, %s1179_s15 }
 0x670   :  { %530 = vrot.lane.b32.xlu1 %v1313_v45, %s1180_s16 }
 0x678   :  { %528 = vrot.lane.b32.xlu1 %v1323_v50, %s1180_s16 }
 0x69d   :  { %v670_v32 = vpop.permute.xlu2 %669 }
 0x6b2   :  { %v468_v25 = vpop.xlane.xlu1 %467 }
 0x6b3   :  { %1125 = vrcp.f32 %v468_v25 }
 0x6b5   :  { %v694_v39 = vpop.permute.xlu0 %693 }
 0x6b9   :  { %v1126_v26 = vpop.eup %1125 }
 0x6ba   :  { %v474_v27 = vmul.f32 %v1126_v26, %v1122_v0  ;;  %v471_v29 = vpop.xlane.xlu1 %470 }
 0x6bb   :  { %1127 = vrcp.f32 %v471_v29 }
 0x6bc   :  { %v476_v28 = vpack.c.bf16 %v474_v27, %v474_v27 }
 0x6be   :  { %1034 = vmatmul.msk.bf16.vlgmr.msra.gmra.mxu1 %vm165_vm1, %v476_v28 }
 0x6c1   :  { %v1128_v33 = vpop.eup %1127 }
 0x6c2   :  { %v475_v34 = vmul.f32 %v1128_v33, %v1124_v11 }
 0x6c4   :  { %v477_v38 = vpack.c.bf16 %v475_v34, %v475_v34 }
 0x6ce   :  { %1058 = vmatmul.msk.bf16.vlgmr.msrb.gmra.mxu1 %vm76_vm0, %v670_v32 }
 0x6d2   :  { %v506_v35 = vpop.permute.xlu1 %505 }
 0x6d3   :  { %v511_v37 = vsel %vm198_vm2, %v506_v35, 0 }
 0x6d4   :  { %520 = vmatpush.bf16.msra.mxu2 %v511_v37 }
 0x6d7   :  { %1035 = vmatmul.msk.bf16.vlgmr.msra.gmra.mxu2 %vm165_vm1, %v477_v38 }
 0x6d8   :  { %708 = vmatpush.bf16.xpose.msrb.mxu2 %v699_v36 }
 0x6da   :  { %v656_v40 = vpop.permute.xlu1 %655 }
 0x6db   :  { %v658_v55 = vadd.f32 %v656_v40, %v645_v21  ;;  %v659_v18 = vadd.f32 %v656_v40, %v1392_v7  ;;  %v787_v40 = vperm.slane %v1329_v52, 7 }
 0x6dd   :  { %v664_v57 = vpack.c.bf16 %v658_v55, %v658_v55  ;;  %v665_v19 = vpack.c.bf16 %v659_v18, %v659_v18 }
 0x6df   :  { %v739_v58 = vunpack.c.l.b16 %v664_v57  ;;  %v763_v20 = vunpack.c.l.b16 %v665_v19 }
 0x6e1   :  { %v740_v59 = vpack.c.b16 %v739_v58, %v739_v58  ;;  %v764_v21 = vpack.c.b16 %v763_v20, %v763_v20 }
 0x6e2   :  { %v531_v41 = vpop.permute.xlu1 %530 }
 0x6e3   :  { %543 = vmatpush.bf16.msrb.mxu3 %v531_v41 }
 0x6e7   :  { %1059 = vmatmul.msk.bf16.vlgmr.msrb.gmra.mxu2 %vm76_vm0, %v694_v39 }
 0x6ea   :  { %v529_v42 = vpop.permute.xlu1 %528 }
 0x6eb   :  { %544 = vmatpush.bf16.msrb.mxu3 %v529_v42 }
 0x73b   :  { %v498_v43 = vpop.f32.mrf.mxu1 }
 0x743   :  { %v500_v5 = vpop.f32.mrf.mxu1 }
 0x74b   :  { %v686_v44 = vpop.f32.mrf.mxu1 }
 0x74c   :  { %v714_v46 = vsel %vm165_vm1, %v686_v44, -inf }
 0x74d   :  { %715 = vmax.xlane.f32.xlu2 %v714_v46 }
 0x753   :  { %v688_v47 = vpop.f32.mrf.mxu1 }
 0x75a   :  { %v522_v48 = vpop.f32.mrf.mxu2 }
 0x75b   :  { %v526_v49 = vpack.c.bf16 %v522_v48, %v498_v43 }
 0x75d   :  { %1036 = vmatmul.msk.bf16.vlgmr.msrb.gmra.mxu3 %vm76_vm0, %v526_v49 }
 0x762   :  { %v524_v51 = vpop.f32.mrf.mxu2 }
 0x76a   :  { %v710_v53 = vpop.f32.mrf.mxu2 }
 0x76b   :  { %v717_v54 = vsel %vm165_vm1, %v710_v53, -inf }
 0x76c   :  { %718 = vmax.xlane.f32.xlu0 %v717_v54 }
 0x772   :  { %v712_v56 = vpop.f32.mrf.mxu2 }
 0x780   :  { %741 = vrot.lane.b32.xlu0 %v740_v59, %s1181_s0 }
 0x788   :  { %790 = vrot.lane.b32.xlu0 %v1313_v45, %s1179_s15 }
 0x790   :  { %788 = vrot.lane.b32.xlu0 %v1323_v50, %s1179_s15 }
 0x7c0   :  { %v716_v60 = vpop.xlane.xlu2 %715 }
 0x7c1   :  { %v720_v61 = vsub.f32 %v686_v44, %v716_v60 }
 0x7c3   :  { %v722_v62 = vmul.f32 1.442695, %v720_v61 }
 0x7c5   :  { %1129 = vpow2.f32 %v722_v62 }
 0x7cb   :  { %v1130_v63 = vpop.eup %1129 }
 0x7cc   :  { %v726_v0 = vsel %vm165_vm1, %v1130_v63, 0.0 }
 0x7cd   :  { %727 = vadd.xlane.f32.xlu1 %v726_v0 }
 0x7df   :  { %v719_v2 = vpop.xlane.xlu0 %718 }
 0x7e0   :  { %v721_v4 = vsub.f32 %v710_v53, %v719_v2  ;;  %v546_v6 = vpop.f32.mrf.mxu3 }
 0x7e1   :  { %v547_v9 = vadd.f32 %v546_v6, %v527_v1  ;;  %v1097_v6 = vld [vmem:[%s1486_s5 + $0x8] sm:$0xff] }
 0x7e2   :  { %v724_v3 = vmul.f32 1.442695, %v721_v4 }
 0x7e3   :  { %v551_v22 = vadd.f32 %v547_v9, %v1336_v16 }
 0x7e4   :  { %1131 = vpow2.f32 %v724_v3 }
 0x7e5   :  { %v553_v23 = vsel %vm76_vm0, %v551_v22, 0.0 }
 0x7e8   :  { %v548_v45 = vpop.f32.mrf.mxu3 }
 0x7e9   :  { %v549_v10 = vadd.f32 %v548_v45, %v527_v1 }
 0x7ea   :  { %v1132_v11 = vpop.eup %1131 }
 0x7eb   :  { %v729_v50 = vsel %vm165_vm1, %v1132_v11, 0.0  ;;  %v552_v12 = vadd.f32 %v549_v10, %v1338_v17  ;;  %v1096_v10 = vld [vmem:[%s1486_s5] sm:$0xff] }
 0x7ec   :  { %730 = vadd.xlane.f32.xlu2 %v729_v50 }
 0x7ed   :  { %v556_v13 = vsel %vm76_vm0, %v552_v12, 0.0 }
 0x7ee   :  { %557 = vadd.xlane.f32.xlu1 %v556_v13 }
 0x7f2   :  { %v742_v14 = vpop.permute.xlu0 %741 }
 0x7f3   :  { %v747_v15 = vsel %vm198_vm2, %v742_v14, 0 }
 0x7f4   :  { %756 = vmatpush.bf16.msra.mxu3 %v747_v15 }
 0x7f8   :  { %915 = vmatpush.bf16.msrb.mxu3 %v1097_v6 }
 0x7fa   :  { %v791_v8 = vpop.permute.xlu0 %790 }
 0x7fb   :  { %803 = vmatpush.bf16.msra.mxu1 %v791_v8 }
 0x7fc   :  { %916 = vmatpush.bf16.msrb.mxu3 %v1096_v10 }
 0x802   :  { %v789_v34 = vpop.permute.xlu0 %788 }
 0x803   :  { %804 = vmatpush.bf16.msra.mxu1 %v789_v34 }
 0x804   :  { %765 = vrot.lane.b32.xlu2 %v764_v21, %s1181_s0 }
 0x82d   :  { %554 = vadd.xlane.f32.xlu2 %v553_v23 }
 0x840   :  { %v728_v24 = vpop.xlane.xlu1 %727 }
 0x841   :  { %1133 = vrcp.f32 %v728_v24 }
 0x847   :  { %v1134_v25 = vpop.eup %1133 }
 0x848   :  { %v734_v26 = vmul.f32 %v1134_v25, %v1130_v63 }
 0x84a   :  { %v736_v27 = vpack.c.bf16 %v734_v26, %v734_v26 }
 0x84c   :  { %1060 = vmatmul.msk.bf16.vlgmr.msra.gmra.mxu3 %vm165_vm1, %v736_v27 }
 0x85f   :  { %v731_v28 = vpop.xlane.xlu2 %730 }
 0x860   :  { %1135 = vrcp.f32 %v731_v28  ;;  %v597_v28 = vperm.slane %v1329_v52, 2 }
 0x861   :  { %v558_v54 = vpop.xlane.xlu1 %557 }
 0x862   :  { %v560_v55 = vmul.f32 %v558_v54, %v1289_v30 }
 0x864   :  { %v562_v57 = vsub.f32 %v552_v12, %v560_v55 }
 0x866   :  { %v1136_v29 = vpop.eup %1135  ;;  %v564_v58 = vmul.f32 %v562_v57, %v562_v57 }
 0x867   :  { %v735_v7 = vmul.f32 %v1136_v29, %v1132_v11  ;;  %v766_v31 = vpop.permute.xlu2 %765 }
 0x868   :  { %v771_v32 = vsel %vm198_vm2, %v766_v31, 0  ;;  %v568_v59 = vsel %vm76_vm0, %v564_v58, 0.0 }
 0x869   :  { %v737_v33 = vpack.c.bf16 %v735_v7, %v735_v7  ;;  %780 = vmatpush.bf16.msra.mxu0 %v771_v32  ;;  %v600_v32 = vperm.slane %v1329_v52, 3 }
 0x86c   :  { %1061 = vmatmul.msk.bf16.vlgmr.msra.gmra.mxu0 %vm165_vm1, %v737_v33 }
 0x8a0   :  { %v555_v44 = vpop.xlane.xlu2 %554 }
 0x8a1   :  { %v559_v47 = vmul.f32 %v555_v44, %v1289_v30 }
 0x8a3   :  { %v561_v51 = vsub.f32 %v551_v22, %v559_v47 }
 0x8a5   :  { %v563_v56 = vmul.f32 %v561_v51, %v561_v51 }
 0x8cf   :  { %v758_v35 = vpop.f32.mrf.mxu3 }
 0x8d7   :  { %v760_v36 = vpop.f32.mrf.mxu3 }
 0x8e9   :  { %v782_v37 = vpop.f32.mrf.mxu0 }
 0x8ea   :  { %v786_v38 = vpack.c.bf16 %v782_v37, %v758_v35 }
 0x8ec   :  { %1062 = vmatmul.msk.bf16.vlgmr.msra.gmra.mxu1 %vm76_vm0, %v786_v38  ;;  %v1099_v38 = vld [vmem:[%s1486_s5 + $0x18] sm:$0xff] }
 0x8ed   :  { %886 = vmatpush.bf16.msra.mxu2 %v1099_v38 }
 0x8f1   :  { %v784_v39 = vpop.f32.mrf.mxu0 }
 0x969   :  { %v806_v41 = vpop.f32.mrf.mxu1 }
 0x96a   :  { %v807_v42 = vadd.f32 %v806_v41, %v787_v40 }
 0x96c   :  { %v811_v43 = vadd.f32 %v807_v42, %v1336_v16  ;;  %v565_v16 = vsel %vm76_vm0, %v563_v56, 0.0  ;;  %v62_v56 = vld [vmem:[%s1487_s6 + $0x10] sm:$0xff]  ;;  %s1183_s6 = smov [#allocation2]  }
 0x96d   :  { %v857_v58 = vperm.slane %v62_v56, 0  ;;  %s978_s26 = sshll.u32 %s1183_s6, 4  ;;  %s979_s26 = int_to_ptr.vmem [resolvable:$true] %s978_s26 }
 0x96e   :  { %v813_v5 = vsel %vm76_vm0, %v811_v43, 0.0 }
 0x96f   :  { %814 = vadd.xlane.f32.xlu0 %v813_v5 }
 0x971   :  { %v808_v46 = vpop.f32.mrf.mxu1 }
 0x972   :  { %v809_v48 = vadd.f32 %v808_v46, %v787_v40  ;;  %v1098_v40 = vld [vmem:[%s1486_s5 + $0x10] sm:$0xff] }
 0x973   :  { %887 = vmatpush.bf16.msra.mxu2 %v1098_v40 }
 0x974   :  { %v812_v49 = vadd.f32 %v809_v48, %v1338_v17 }
 0x976   :  { %v816_v53 = vsel %vm76_vm0, %v812_v49, 0.0 }
 0x977   :  { %817 = vadd.xlane.f32.xlu1 %v816_v53 }
 0x97f   :  { %566 = vadd.xlane.f32.xlu1 %v565_v16 }
 0x987   :  { %569 = vadd.xlane.f32.xlu1 %v568_v59 }
 0x9e2   :  { %v815_v60 = vpop.xlane.xlu0 %814 }
 0x9e3   :  { %v819_v61 = vmul.f32 %v815_v60, %v1289_v30 }
 0x9e5   :  { %v1432_v17 = vsub.f32 %v811_v43, %v819_v61 }
 0x9e7   :  { %v823_v62 = vmul.f32 %v1432_v17, %v1432_v17 }
 0x9e9   :  { %v825_v63 = vsel %vm76_vm0, %v823_v62, 0.0  ;;  %v860_v62 = vperm.slane %v62_v56, 1 }
 0x9ea   :  { %v818_v0 = vpop.xlane.xlu1 %817  ;;  %826 = vadd.xlane.f32.xlu1 %v825_v63 }
 0x9eb   :  { %v820_v1 = vmul.f32 %v818_v0, %v1289_v30 }
 0x9ed   :  { %v1438_v2 = vsub.f32 %v812_v49, %v820_v1 }
 0x9ef   :  { %v824_v4 = vmul.f32 %v1438_v2, %v1438_v2 }
 0x9f1   :  { %v828_v9 = vsel %vm76_vm0, %v824_v4, 0.0 }
 0x9f2   :  { %829 = vadd.xlane.f32.xlu2 %v828_v9  ;;  %v567_v3 = vpop.xlane.xlu1 %566 }
 0x9f3   :  { %v571_v45 = vmul.f32 %v567_v3, %v1289_v30 }
 0x9f5   :  { %v573_v11 = vadd.f32 1e-05, %v571_v45  ;;  %v923_v45 = vperm.slane %v62_v56, 2 }
 0x9f7   :  { %1137 = vrsqrt.f32 %v573_v11  ;;  %vm581_vm13 = vweird.f32 %v573_v11 }
 0x9fa   :  { %v570_v50 = vpop.xlane.xlu1 %569 }
 0x9fb   :  { %v572_v12 = vmul.f32 %v570_v50, %v1289_v30 }
 0x9fd   :  { %v1138_v13 = vpop.eup %1137  ;;  %v574_v14 = vadd.f32 1e-05, %v572_v12 }
 0x9fe   :  { %v576_v15 = vmul.f32 %v1138_v13, %v573_v11  ;;  %vm582_vm12 = vweird.f32 %v1138_v13 }
 0x9ff   :  { %1139 = vrsqrt.f32 %v574_v14  ;;  %vm583_vm14 = vmor %vm581_vm13, %vm582_vm12  ;;  %vm591_vm1 = vweird.f32 %v574_v14 }
 0xa00   :  { %v577_v18 = vmul.f32 %v1138_v13, %v576_v15 }
 0xa02   :  { %v578_v19 = vmul.f32 0.5, %v577_v18 }
 0xa04   :  { %v579_v20 = vsub.f32 1.5, %v578_v19 }
 0xa05   :  { %v1140_v21 = vpop.eup %1139 }
 0xa06   :  { %v580_v22 = vmul.f32 %v1138_v13, %v579_v20  ;;  %v586_v23 = vmul.f32 %v1140_v21, %v574_v14  ;;  %vm592_vm15 = vweird.f32 %v1140_v21 }
 0xa07   :  { %vm593_vm2 = vmor %vm591_vm1, %vm592_vm15 }
 0xa08   :  { %v587_v24 = vmul.f32 %v1140_v21, %v586_v23  ;;  %v584_v25 = vsel %vm583_vm14, %v1138_v13, %v580_v22 }
 0xa09   :  { %v595_v29 = vmul.f32 %v584_v25, %v561_v51 }
 0xa0a   :  { %v588_v26 = vmul.f32 0.5, %v587_v24 }
 0xa0b   :  { %v598_v33 = vmul.f32 %v597_v28, %v595_v29 }
 0xa0c   :  { %v589_v27 = vsub.f32 1.5, %v588_v26 }
 0xa0d   :  { %v1453_v35 = vadd.f32 %v600_v32, %v598_v33 }
 0xa0e   :  { %v590_v7 = vmul.f32 %v1140_v21, %v589_v27 }
 0xa10   :  { %v594_v31 = vsel %vm593_vm2, %v1140_v21, %v590_v7 }
 0xa11   :  { %v596_v8 = vmul.f32 %v594_v31, %v562_v57 }
 0xa13   :  { %v599_v34 = vmul.f32 %v597_v28, %v596_v8 }
 0xa15   :  { %v1455_v36 = vadd.f32 %v600_v32, %v599_v34 }
 0xa17   :  { %v863_v37 = vpack.c.bf16 %v1455_v36, %v1453_v35 }
 0xa19   :  { %1080 = vmatmul.msk.bf16.vlgmr.msrb.gmra.mxu3 %vm76_vm0, %v863_v37 }
 0xa5d   :  { %v827_v39 = vpop.xlane.xlu1 %826 }
 0xa5e   :  { %v831_v52 = vmul.f32 %v827_v39, %v1289_v30 }
 0xa60   :  { %v833_v41 = vadd.f32 1e-05, %v831_v52 }
 0xa62   :  { %1141 = vrsqrt.f32 %v833_v41  ;;  %vm841_vm4 = vweird.f32 %v833_v41 }
 0xa65   :  { %v830_v42 = vpop.xlane.xlu2 %829 }
 0xa66   :  { %v832_v43 = vmul.f32 %v830_v42, %v1289_v30 }
 0xa68   :  { %v1142_v5 = vpop.eup %1141  ;;  %v834_v44 = vadd.f32 1e-05, %v832_v43 }
 0xa69   :  { %v836_v46 = vmul.f32 %v1142_v5, %v833_v41  ;;  %vm842_vm3 = vweird.f32 %v1142_v5 }
 0xa6a   :  { %1143 = vrsqrt.f32 %v834_v44  ;;  %vm843_vm5 = vmor %vm841_vm4, %vm842_vm3  ;;  %vm851_vm7 = vweird.f32 %v834_v44 }
 0xa6b   :  { %v837_v47 = vmul.f32 %v1142_v5, %v836_v46 }
 0xa6d   :  { %v838_v48 = vmul.f32 0.5, %v837_v47 }
 0xa6f   :  { %v839_v49 = vsub.f32 1.5, %v838_v48 }
 0xa70   :  { %v1144_v51 = vpop.eup %1143 }
 0xa71   :  { %v840_v53 = vmul.f32 %v1142_v5, %v839_v49  ;;  %v846_v54 = vmul.f32 %v1144_v51, %v834_v44  ;;  %vm852_vm6 = vweird.f32 %v1144_v51 }
 0xa72   :  { %vm853_vm8 = vmor %vm851_vm7, %vm852_vm6 }
 0xa73   :  { %v847_v55 = vmul.f32 %v1144_v51, %v846_v54  ;;  %v844_v57 = vsel %vm843_vm5, %v1142_v5, %v840_v53 }
 0xa74   :  { %v855_v59 = vmul.f32 %v844_v57, %v1432_v17 }
 0xa75   :  { %v848_v30 = vmul.f32 0.5, %v847_v55 }
 0xa76   :  { %v858_v63 = vmul.f32 %v857_v58, %v855_v59 }
 0xa77   :  { %v849_v16 = vsub.f32 1.5, %v848_v30 }
 0xa78   :  { %v861_v4 = vadd.f32 %v860_v62, %v858_v63 }
 0xa79   :  { %v850_v60 = vmul.f32 %v1144_v51, %v849_v16 }
 0xa7b   :  { %v854_v61 = vsel %vm853_vm8, %v1144_v51, %v850_v60 }
 0xa7c   :  { %v856_v0 = vmul.f32 %v854_v61, %v1438_v2 }
 0xa7e   :  { %v859_v1 = vmul.f32 %v857_v58, %v856_v0 }
 0xa80   :  { %v862_v6 = vadd.f32 %v860_v62, %v859_v1 }
 0xa82   :  { %v864_v9 = vpack.c.bf16 %v862_v6, %v861_v4 }
 0xa84   :  { %1071 = vmatmul.msk.bf16.vlgmr.msra.gmra.mxu2 %vm76_vm0, %v864_v9 }
 0xa9c   :  { %v918_v3 = vpop.f32.mrf.mxu3 }
 0xaa4   :  { %v920_v12 = vpop.f32.mrf.mxu3 }
 0xb07   :  { %v889_v10 = vpop.f32.mrf.mxu2 }
 0xb08   :  { %v919_v11 = vadd.f32 %v918_v3, %v889_v10 }
 0xb0a   :  { %v924_v50 = vadd.f32 %v923_v45, %v919_v11 }
 0xb0c   :  { %v1081_v17 = vmul.f32 -1.442695, %v924_v50 }
 0xb0e   :  { %1145 = vpow2.f32 %v1081_v17 }
 0xb0f   :  { %v891_v13 = vpop.f32.mrf.mxu2 }
 0xb10   :  { %v921_v14 = vadd.f32 %v920_v12, %v891_v13 }
 0xb12   :  { %v925_v15 = vadd.f32 %v923_v45, %v921_v14 }
 0xb14   :  { %v1146_v18 = vpop.eup %1145  ;;  %v1082_v19 = vmul.f32 -1.442695, %v925_v15 }
 0xb15   :  { %v932_v2 = vadd.f32 1.0, %v1146_v18 }
 0xb16   :  { %1147 = vpow2.f32 %v1082_v19 }
 0xb17   :  { %1149 = vrcp.f32 %v932_v2  ;;  %v945_v25 = vand.u32 2147483648, %v932_v2  ;;  %v943_v27 = vand.u32 2147483647, %v932_v2  ;;  %vm939_vm10 = vweird.f32 %v932_v2 }
 0xb19   :  { %v946_v7 = vor.u32 1.1754944e-38, %v945_v25  ;;  %vm944_vm12 = vcmp.eq.f32.partialorder %v943_v27, 8.507059e+37 }
 0xb1c   :  { %v1148_v20 = vpop.eup %1147 }
 0xb1d   :  { %v1150_v21 = vpop.eup %1149  ;;  %v933_v22 = vadd.f32 1.0, %v1148_v20 }
 0xb1e   :  { %v935_v23 = vmul.f32 %v1150_v21, %v932_v2  ;;  %vm940_vm9 = vweird.f32 %v1150_v21 }
 0xb1f   :  { %1151 = vrcp.f32 %v933_v22  ;;  %vm941_vm11 = vmor %vm939_vm10, %vm940_vm9  ;;  %v958_v37 = vand.u32 2147483647, %v933_v22  ;;  %v960_v38 = vand.u32 2147483648, %v933_v22  ;;  %vm954_vm14 = vweird.f32 %v933_v22 }
 0xb20   :  { %v936_v24 = vsub.f32 1.0, %v935_v23 }
 0xb21   :  { %v961_v43 = vor.u32 1.1754944e-38, %v960_v38  ;;  %vm959_vm1 = vcmp.eq.f32.partialorder %v958_v37, 8.507059e+37 }
 0xb22   :  { %v937_v26 = vmul.f32 %v1150_v21, %v936_v24 }
 0xb24   :  { %v938_v28 = vadd.f32 %v1150_v21, %v937_v26 }
 0xb25   :  { %v1152_v29 = vpop.eup %1151 }
 0xb26   :  { %v950_v31 = vmul.f32 %v1152_v29, %v933_v22  ;;  %v942_v32 = vsel %vm941_vm11, %v1150_v21, %v938_v28  ;;  %vm955_vm13 = vweird.f32 %v1152_v29 }
 0xb27   :  { %v947_v33 = vsel %vm944_vm12, %v946_v7, %v942_v32  ;;  %vm956_vm15 = vmor %vm954_vm14, %vm955_vm13 }
 0xb28   :  { %v951_v8 = vsub.f32 1.0, %v950_v31  ;;  %v966_v34 = vsub.f32 1.0, %v947_v33  ;;  %v964_v52 = vmul.f32 %v947_v33, %v1453_v35 }
 0xb2a   :  { %v952_v39 = vmul.f32 %v1152_v29, %v951_v8  ;;  %v968_v40 = vmul.f32 %v966_v34, %v861_v4 }
 0xb2c   :  { %v953_v41 = vadd.f32 %v1152_v29, %v952_v39  ;;  %v970_v42 = vadd.f32 %v968_v40, %v964_v52 }
 0xb2e   :  { %v957_v5 = vsel %vm956_vm15, %v1152_v29, %v953_v41  ;;  %972 = vst.msk [vmem:[#allocation2] sm:$0xff] %vm76_vm0, %v970_v42 }
 0xb2f   :  { %v962_v44 = vsel %vm959_vm1, %v961_v43, %v957_v5 }
 0xb30   :  { %v967_v46 = vsub.f32 1.0, %v962_v44  ;;  %v965_v35 = vmul.f32 %v962_v44, %v1455_v36 }
 0xb32   :  { %v969_v47 = vmul.f32 %v967_v46, %v862_v6 }
 0xb34   :  { %v971_v48 = vadd.f32 %v969_v47, %v965_v35 }
 0xb36   :  { %973 = vst.msk [vmem:[#allocation2 + $0x8] sm:$0xff] %vm76_vm0, %v971_v48 }
 0xb37   :  { %986 = dma.vmem_to_hbm [thread:$0]  %s979_s26, 256, %s981_s29, [#allocation3], %s1184_s30, %s1184_s30, %s1185_s1  }
 0xb38   :  { %1177 = dma.done.wait [#allocation3], 256  }
 0xb39   :  { %1178 = vsyncadd [#allocation3], 4294967040 }
 0xb3a   :  { %991 = vsyncpa [#allocation3], 1 }

</bundles_post_ra>
